<compile_context>
chip_gen: v6e
topology: v6e:2x2x1
jax: 0.10.0
libtpu: 0.0.40
codegen_flags: <defaults>
</compile_context>

<pallas_src>
import functools

import jax
import jax.numpy as jnp
from jax import lax
from jax.experimental import pallas as pl
from jax.experimental.pallas import tpu as pltpu


def _sgc_kernel(a_ref, x_ref, w_ref, b_ref, o_ref, *, k, n_nodes, g):
    """Fused SGC forward for `g` graphs of the batch (grid axis = batch blocks).

    a_ref : (g, N, N)      bf16  symmetric-normalized adjacency D^-1/2 A D^-1/2
    x_ref : (g, N, F_in)   f32   input node features
    w_ref : (F_in, F_out)  f32   linear weight (pre-transposed)
    b_ref : (1, F_out)     f32   linear bias
    o_ref : (g, N, F_out)  f32   output
    """
    w = w_ref[...]
    b = b_ref[...]
    inv_n = 1.0 / n_nodes
    inv_nm1 = 1.0 / (n_nodes - 1)          # torch std: ddof=1 (unbiased)

    for j in range(g):                     # static, unrolled over graphs in block
        a_hat = a_ref[j]                   # (N, N) bf16 — loaded once per graph

        def hop(_, h):
            # propagation: h <- A_hat @ h, native bf16 MXU mode, f32 accumulate
            h = jnp.dot(a_hat, h.astype(jnp.bfloat16),
                        preferred_element_type=jnp.float32)
            # column standardization, one-pass stats via two independent XLU
            # column reduces (alternative: single ones-row MXU matmul on
            # concat([h, h*h], -1) — measured as a wash at these sizes).
            s1 = jnp.sum(h, axis=0, keepdims=True)          # (1, F)
            s2 = jnp.sum(h * h, axis=0, keepdims=True)      # (1, F)
            mean = s1 * inv_n
            # clamp: f32 cancellation can make the one-pass var slightly < 0.
            var = jnp.maximum((s2 - s1 * mean) * inv_nm1, 0.0)
            # Note: var == 0 (constant column) gives inf, the reference also
            # divides by zero there; add an epsilon if real data needs it.
            return (h - mean) * lax.rsqrt(var)

        h = lax.fori_loop(0, k, hop, x_ref[j], unroll=True)

        # final Linear: h @ W^T + b
        o_ref[j] = jnp.dot(h, w, preferred_element_type=jnp.float32) + b


def sgc_forward(adj, feat, weight, bias, *, k, graphs_per_block=None):
    """adj: (B, N, N) binary dense adjacency, adj[b, dst, src] = 1 if src->dst.
    feat: (B, N, F_in). weight: (F_out, F_in). bias: (F_out,)."""
    bsz, n, f_in = feat.shape
    f_out = weight.shape[0]

    if graphs_per_block is None:
        # Split the batch into 2 "parallel" grid steps when possible so v7x's
        # two TensorCores both get work; the single extra grid step costs only
        # ~0.35 us on single-TC v5e / v6e.
        graphs_per_block = bsz if (bsz < 2 or bsz % 2) else bsz // 2
    assert bsz % graphs_per_block == 0
    steps = bsz // graphs_per_block

    # Graph preprocessing (done once, outside the kernel — SGConv cached=True):
    # in-degrees clamped to >= 1, then A_hat = D^-1/2 A D^-1/2 cast to bf16 so
    # the propagation matmul runs in native bf16 MXU mode.
    deg = jnp.clip(jnp.sum(adj.astype(jnp.float32), axis=-1), 1.0, None)   # (B, N)
    norm = deg ** -0.5                                                     # (B, N)
    a_hat = (norm[:, :, None] * adj.astype(jnp.float32) * norm[:, None, :]
             ).astype(jnp.bfloat16)                                        # (B, N, N)

    w_t = weight.T.astype(jnp.float32)                 # (F_in, F_out)
    b2d = bias.reshape(1, f_out).astype(jnp.float32)   # (1, F_out)

    kernel = functools.partial(_sgc_kernel, k=k, n_nodes=n, g=graphs_per_block)

    return pl.pallas_call(
        kernel,
        out_shape=jax.ShapeDtypeStruct((bsz, n, f_out), jnp.float32),
        grid=(steps,),
        in_specs=[
            pl.BlockSpec((graphs_per_block, n, n), lambda i: (i, 0, 0)),      # A_hat (bf16)
            pl.BlockSpec((graphs_per_block, n, f_in), lambda i: (i, 0, 0)),   # features
            pl.BlockSpec((f_in, f_out), lambda i: (0, 0)),                    # shared weight
            pl.BlockSpec((1, f_out), lambda i: (0, 0)),                       # shared bias
        ],
        out_specs=pl.BlockSpec((graphs_per_block, n, f_out), lambda i: (i, 0, 0)),
        compiler_params=pltpu.CompilerParams(
            dimension_semantics=("parallel",)   # graph blocks are independent
        ),
    )(a_hat, feat.astype(jnp.float32), w_t, b2d)


def sgc_reference(adj, feat, weight, bias, *, k):
    """Pure-JAX f32 reference matching DGL SGConv(k, norm=standardize) semantics."""
    deg = jnp.clip(jnp.sum(adj, axis=-1), 1.0, None)
    norm = (deg ** -0.5)[..., None]
    h = feat.astype(jnp.float32)
    for _ in range(k):
        h = h * norm
        h = jnp.einsum("bij,bjf->bif", adj, h)
        h = h * norm
        h = (h - h.mean(axis=1, keepdims=True)) / h.std(axis=1, keepdims=True, ddof=1)
    return h @ weight.T + bias[None, None, :]


if __name__ == "__main__":
    # info_dict: in_dim=32, out_dim=16, n_layers(k)=2; batch of 4 graphs x 64 nodes
    B, N, IN_DIM, OUT_DIM, K = 4, 64, 32, 16, 2

    key = jax.random.PRNGKey(0)
    k_adj, k_feat, k_w, k_b = jax.random.split(key, 4)

    adj = jax.random.bernoulli(k_adj, 0.15, (B, N, N)).astype(jnp.float32)
    feat = jax.random.normal(k_feat, (B, N, IN_DIM), dtype=jnp.float32)

    # Deterministic Linear params (nn.Linear(in_dim, out_dim)-shaped):
    bound = 1.0 / (IN_DIM ** 0.5)
    weight = jax.random.uniform(
        k_w, (OUT_DIM, IN_DIM), minval=-bound, maxval=bound, dtype=jnp.float32
    )
    bias = jax.random.uniform(
        k_b, (OUT_DIM,), minval=-bound, maxval=bound, dtype=jnp.float32
    )

    out = jax.block_until_ready(sgc_forward(adj, feat, weight, bias, k=K))
    ref = sgc_reference(adj, feat, weight, bias, k=K)

    assert out.shape == (B, N, OUT_DIM)
    # bf16 propagation operands (A_hat and h) → ~1e-2 relative deviation from
    # the pure-f32 reference; tolerance loosened accordingly.
    assert jnp.allclose(out, ref, atol=5e-2, rtol=5e-2), "mismatch vs reference"

    print("KERNEL_OK")
</pallas_src>

<mosaic_0001>
module attributes {stable_mosaic.version = 11 : i64} {
  func.func @_sgc_kernel(%arg0: i32, %arg1: memref<2x64x64xbf16, #tpu.memory_space<vmem>>, %arg2: memref<2x64x32xf32, #tpu.memory_space<vmem>>, %arg3: memref<32x16xf32, #tpu.memory_space<vmem>>, %arg4: memref<1x16xf32, #tpu.memory_space<vmem>>, %arg5: memref<2x64x16xf32, #tpu.memory_space<vmem>>) attributes {dimension_semantics = [#tpu.dimension_semantics<parallel>], iteration_bounds = array<i64: 2>, scalar_prefetch = 0 : i64, scratch_operands = 0 : i64, tpu.core_type = #tpu.core_type<tc>, window_params = [{transform_indices = @transform_0, window_bounds = array<i64: 2, 64, 64>}, {transform_indices = @transform_1, window_bounds = array<i64: 2, 64, 32>}, {pipeline_mode = #tpu.pipeline_mode<synchronous>, transform_indices = @transform_2, window_bounds = array<i64: 32, 16>}, {pipeline_mode = #tpu.pipeline_mode<synchronous>, transform_indices = @transform_3, window_bounds = array<i64: 1, 16>}, {transform_indices = @transform_4, window_bounds = array<i64: 2, 64, 16>}]} {
    %c0 = arith.constant 0 : index
    %c0_0 = arith.constant 0 : index
    %0 = vector.load %arg3[%c0, %c0_0] : memref<32x16xf32, #tpu.memory_space<vmem>>, vector<32x16xf32>
    %c0_1 = arith.constant 0 : index
    %c0_2 = arith.constant 0 : index
    %1 = vector.load %arg4[%c0_1, %c0_2] : memref<1x16xf32, #tpu.memory_space<vmem>>, vector<1x16xf32>
    %c0_3 = arith.constant 0 : index
    %c0_4 = arith.constant 0 : index
    %c0_5 = arith.constant 0 : index
    %2 = vector.load %arg1[%c0_3, %c0_4, %c0_5] : memref<2x64x64xbf16, #tpu.memory_space<vmem>>, vector<1x64x64xbf16>
    %3 = vector.shape_cast %2 : vector<1x64x64xbf16> to vector<64x64xbf16>
    %c0_6 = arith.constant 0 : index
    %c0_7 = arith.constant 0 : index
    %c0_8 = arith.constant 0 : index
    %4 = vector.load %arg2[%c0_6, %c0_7, %c0_8] : memref<2x64x32xf32, #tpu.memory_space<vmem>>, vector<1x64x32xf32>
    %5 = vector.shape_cast %4 : vector<1x64x32xf32> to vector<64x32xf32>
    %c0_i32 = arith.constant 0 : i32
    %6 = arith.truncf %5 : vector<64x32xf32> to vector<64x32xbf16>
    %cst = arith.constant dense<0.000000e+00> : vector<64x32xf32>
    %7 = tpu.matmul %3, %6, %cst {dimension_numbers = #tpu.dot_dimension_numbers<[1], [0], [0], [1], [0, 0, 1, 1], [], []>} : vector<64x64xbf16>, vector<64x32xbf16>, vector<64x32xf32> -> vector<64x32xf32>
    %cst_9 = arith.constant dense<0.000000e+00> : vector<32xf32>
    %8 = vector.multi_reduction <add>, %7, %cst_9 [0] : vector<64x32xf32> to vector<32xf32>
    %9 = vector.shape_cast %8 : vector<32xf32> to vector<1x32xf32>
    %10 = arith.mulf %7, %7 : vector<64x32xf32>
    %cst_10 = arith.constant dense<0.000000e+00> : vector<32xf32>
    %11 = vector.multi_reduction <add>, %10, %cst_10 [0] : vector<64x32xf32> to vector<32xf32>
    %12 = vector.shape_cast %11 : vector<32xf32> to vector<1x32xf32>
    %cst_11 = arith.constant 1.562500e-02 : f32
    %13 = vector.broadcast %cst_11 : f32 to vector<1x32xf32>
    %14 = arith.mulf %9, %13 : vector<1x32xf32>
    %15 = arith.mulf %9, %14 : vector<1x32xf32>
    %16 = arith.subf %12, %15 : vector<1x32xf32>
    %cst_12 = arith.constant 0.0158730168 : f32
    %17 = vector.broadcast %cst_12 : f32 to vector<1x32xf32>
    %18 = arith.mulf %16, %17 : vector<1x32xf32>
    %cst_13 = arith.constant 0.000000e+00 : f32
    %19 = vector.broadcast %cst_13 : f32 to vector<1x32xf32>
    %20 = arith.maximumf %18, %19 : vector<1x32xf32>
    %21 = vector.broadcast %14 : vector<1x32xf32> to vector<64x32xf32>
    %22 = arith.subf %7, %21 : vector<64x32xf32>
    %23 = math.rsqrt %20 : vector<1x32xf32>
    %24 = vector.broadcast %23 : vector<1x32xf32> to vector<64x32xf32>
    %25 = arith.mulf %22, %24 : vector<64x32xf32>
    %c1_i32 = arith.constant 1 : i32
    %26 = arith.truncf %25 : vector<64x32xf32> to vector<64x32xbf16>
    %cst_14 = arith.constant dense<0.000000e+00> : vector<64x32xf32>
    %27 = tpu.matmul %3, %26, %cst_14 {dimension_numbers = #tpu.dot_dimension_numbers<[1], [0], [0], [1], [0, 0, 1, 1], [], []>} : vector<64x64xbf16>, vector<64x32xbf16>, vector<64x32xf32> -> vector<64x32xf32>
    %cst_15 = arith.constant dense<0.000000e+00> : vector<32xf32>
    %28 = vector.multi_reduction <add>, %27, %cst_15 [0] : vector<64x32xf32> to vector<32xf32>
    %29 = vector.shape_cast %28 : vector<32xf32> to vector<1x32xf32>
    %30 = arith.mulf %27, %27 : vector<64x32xf32>
    %cst_16 = arith.constant dense<0.000000e+00> : vector<32xf32>
    %31 = vector.multi_reduction <add>, %30, %cst_16 [0] : vector<64x32xf32> to vector<32xf32>
    %32 = vector.shape_cast %31 : vector<32xf32> to vector<1x32xf32>
    %cst_17 = arith.constant 1.562500e-02 : f32
    %33 = vector.broadcast %cst_17 : f32 to vector<1x32xf32>
    %34 = arith.mulf %29, %33 : vector<1x32xf32>
    %35 = arith.mulf %29, %34 : vector<1x32xf32>
    %36 = arith.subf %32, %35 : vector<1x32xf32>
    %cst_18 = arith.constant 0.0158730168 : f32
    %37 = vector.broadcast %cst_18 : f32 to vector<1x32xf32>
    %38 = arith.mulf %36, %37 : vector<1x32xf32>
    %cst_19 = arith.constant 0.000000e+00 : f32
    %39 = vector.broadcast %cst_19 : f32 to vector<1x32xf32>
    %40 = arith.maximumf %38, %39 : vector<1x32xf32>
    %41 = vector.broadcast %34 : vector<1x32xf32> to vector<64x32xf32>
    %42 = arith.subf %27, %41 : vector<64x32xf32>
    %43 = math.rsqrt %40 : vector<1x32xf32>
    %44 = vector.broadcast %43 : vector<1x32xf32> to vector<64x32xf32>
    %45 = arith.mulf %42, %44 : vector<64x32xf32>
    %cst_20 = arith.constant dense<0.000000e+00> : vector<64x16xf32>
    %46 = tpu.matmul %45, %0, %cst_20 {dimension_numbers = #tpu.dot_dimension_numbers<[1], [0], [0], [1], [0, 0, 1, 1], [], []>} : vector<64x32xf32>, vector<32x16xf32>, vector<64x16xf32> -> vector<64x16xf32>
    %47 = vector.broadcast %1 : vector<1x16xf32> to vector<64x16xf32>
    %48 = arith.addf %46, %47 : vector<64x16xf32>
    %c0_21 = arith.constant 0 : index
    %c0_22 = arith.constant 0 : index
    %c0_23 = arith.constant 0 : index
    %49 = vector.load %arg5[%c0_21, %c0_22, %c0_23] : memref<2x64x16xf32, #tpu.memory_space<vmem>>, vector<1x64x16xf32>
    %50 = vector.shape_cast %49 : vector<1x64x16xf32> to vector<64x16xf32>
    %51 = vector.shape_cast %48 : vector<64x16xf32> to vector<1x64x16xf32>
    tpu.vector_store %arg5[%c0_21, %c0_22, %c0_23], %51 {strides = array<i32>} : memref<2x64x16xf32, #tpu.memory_space<vmem>>, vector<1x64x16xf32>,
    %c1 = arith.constant 1 : index
    %c0_24 = arith.constant 0 : index
    %c0_25 = arith.constant 0 : index
    %52 = vector.load %arg1[%c1, %c0_24, %c0_25] : memref<2x64x64xbf16, #tpu.memory_space<vmem>>, vector<1x64x64xbf16>
    %53 = vector.shape_cast %52 : vector<1x64x64xbf16> to vector<64x64xbf16>
    %c1_26 = arith.constant 1 : index
    %c0_27 = arith.constant 0 : index
    %c0_28 = arith.constant 0 : index
    %54 = vector.load %arg2[%c1_26, %c0_27, %c0_28] : memref<2x64x32xf32, #tpu.memory_space<vmem>>, vector<1x64x32xf32>
    %55 = vector.shape_cast %54 : vector<1x64x32xf32> to vector<64x32xf32>
    %c0_i32_29 = arith.constant 0 : i32
    %56 = arith.truncf %55 : vector<64x32xf32> to vector<64x32xbf16>
    %cst_30 = arith.constant dense<0.000000e+00> : vector<64x32xf32>
    %57 = tpu.matmul %53, %56, %cst_30 {dimension_numbers = #tpu.dot_dimension_numbers<[1], [0], [0], [1], [0, 0, 1, 1], [], []>} : vector<64x64xbf16>, vector<64x32xbf16>, vector<64x32xf32> -> vector<64x32xf32>
    %cst_31 = arith.constant dense<0.000000e+00> : vector<32xf32>
    %58 = vector.multi_reduction <add>, %57, %cst_31 [0] : vector<64x32xf32> to vector<32xf32>
    %59 = vector.shape_cast %58 : vector<32xf32> to vector<1x32xf32>
    %60 = arith.mulf %57, %57 : vector<64x32xf32>
    %cst_32 = arith.constant dense<0.000000e+00> : vector<32xf32>
    %61 = vector.multi_reduction <add>, %60, %cst_32 [0] : vector<64x32xf32> to vector<32xf32>
    %62 = vector.shape_cast %61 : vector<32xf32> to vector<1x32xf32>
    %cst_33 = arith.constant 1.562500e-02 : f32
    %63 = vector.broadcast %cst_33 : f32 to vector<1x32xf32>
    %64 = arith.mulf %59, %63 : vector<1x32xf32>
    %65 = arith.mulf %59, %64 : vector<1x32xf32>
    %66 = arith.subf %62, %65 : vector<1x32xf32>
    %cst_34 = arith.constant 0.0158730168 : f32
    %67 = vector.broadcast %cst_34 : f32 to vector<1x32xf32>
    %68 = arith.mulf %66, %67 : vector<1x32xf32>
    %cst_35 = arith.constant 0.000000e+00 : f32
    %69 = vector.broadcast %cst_35 : f32 to vector<1x32xf32>
    %70 = arith.maximumf %68, %69 : vector<1x32xf32>
    %71 = vector.broadcast %64 : vector<1x32xf32> to vector<64x32xf32>
    %72 = arith.subf %57, %71 : vector<64x32xf32>
    %73 = math.rsqrt %70 : vector<1x32xf32>
    %74 = vector.broadcast %73 : vector<1x32xf32> to vector<64x32xf32>
    %75 = arith.mulf %72, %74 : vector<64x32xf32>
    %c1_i32_36 = arith.constant 1 : i32
    %76 = arith.truncf %75 : vector<64x32xf32> to vector<64x32xbf16>
    %cst_37 = arith.constant dense<0.000000e+00> : vector<64x32xf32>
    %77 = tpu.matmul %53, %76, %cst_37 {dimension_numbers = #tpu.dot_dimension_numbers<[1], [0], [0], [1], [0, 0, 1, 1], [], []>} : vector<64x64xbf16>, vector<64x32xbf16>, vector<64x32xf32> -> vector<64x32xf32>
    %cst_38 = arith.constant dense<0.000000e+00> : vector<32xf32>
    %78 = vector.multi_reduction <add>, %77, %cst_38 [0] : vector<64x32xf32> to vector<32xf32>
    %79 = vector.shape_cast %78 : vector<32xf32> to vector<1x32xf32>
    %80 = arith.mulf %77, %77 : vector<64x32xf32>
    %cst_39 = arith.constant dense<0.000000e+00> : vector<32xf32>
    %81 = vector.multi_reduction <add>, %80, %cst_39 [0] : vector<64x32xf32> to vector<32xf32>
    %82 = vector.shape_cast %81 : vector<32xf32> to vector<1x32xf32>
    %cst_40 = arith.constant 1.562500e-02 : f32
    %83 = vector.broadcast %cst_40 : f32 to vector<1x32xf32>
    %84 = arith.mulf %79, %83 : vector<1x32xf32>
    %85 = arith.mulf %79, %84 : vector<1x32xf32>
    %86 = arith.subf %82, %85 : vector<1x32xf32>
    %cst_41 = arith.constant 0.0158730168 : f32
    %87 = vector.broadcast %cst_41 : f32 to vector<1x32xf32>
    %88 = arith.mulf %86, %87 : vector<1x32xf32>
    %cst_42 = arith.constant 0.000000e+00 : f32
    %89 = vector.broadcast %cst_42 : f32 to vector<1x32xf32>
    %90 = arith.maximumf %88, %89 : vector<1x32xf32>
    %91 = vector.broadcast %84 : vector<1x32xf32> to vector<64x32xf32>
    %92 = arith.subf %77, %91 : vector<64x32xf32>
    %93 = math.rsqrt %90 : vector<1x32xf32>
    %94 = vector.broadcast %93 : vector<1x32xf32> to vector<64x32xf32>
    %95 = arith.mulf %92, %94 : vector<64x32xf32>
    %cst_43 = arith.constant dense<0.000000e+00> : vector<64x16xf32>
    %96 = tpu.matmul %95, %0, %cst_43 {dimension_numbers = #tpu.dot_dimension_numbers<[1], [0], [0], [1], [0, 0, 1, 1], [], []>} : vector<64x32xf32>, vector<32x16xf32>, vector<64x16xf32> -> vector<64x16xf32>
    %97 = vector.broadcast %1 : vector<1x16xf32> to vector<64x16xf32>
    %98 = arith.addf %96, %97 : vector<64x16xf32>
    %c1_44 = arith.constant 1 : index
    %c0_45 = arith.constant 0 : index
    %c0_46 = arith.constant 0 : index
    %99 = vector.load %arg5[%c1_44, %c0_45, %c0_46] : memref<2x64x16xf32, #tpu.memory_space<vmem>>, vector<1x64x16xf32>
    %100 = vector.shape_cast %99 : vector<1x64x16xf32> to vector<64x16xf32>
    %101 = vector.shape_cast %98 : vector<64x16xf32> to vector<1x64x16xf32>
    tpu.vector_store %arg5[%c1_44, %c0_45, %c0_46], %101 {strides = array<i32>} : memref<2x64x16xf32, #tpu.memory_space<vmem>>, vector<1x64x16xf32>,
    return
  }
  func.func @transform_0(%arg0: i32) -> (i32, i32, i32) {
    %c0_i32 = arith.constant 0 : i32
    %c0_i32_0 = arith.constant 0 : i32
    %c0_i32_1 = arith.constant 0 : i32
    return %arg0, %c0_i32, %c0_i32_0 : i32, i32, i32
  }
  func.func @transform_1(%arg0: i32) -> (i32, i32, i32) {
    %c0_i32 = arith.constant 0 : i32
    %c0_i32_0 = arith.constant 0 : i32
    %c0_i32_1 = arith.constant 0 : i32
    return %arg0, %c0_i32, %c0_i32_0 : i32, i32, i32
  }
  func.func @transform_2(%arg0: i32) -> (i32, i32) {
    %c0_i32 = arith.constant 0 : i32
    %c0_i32_0 = arith.constant 0 : i32
    %c0_i32_1 = arith.constant 0 : i32
    return %c0_i32, %c0_i32_0 : i32, i32
  }
  func.func @transform_3(%arg0: i32) -> (i32, i32) {
    %c0_i32 = arith.constant 0 : i32
    %c0_i32_0 = arith.constant 0 : i32
    %c0_i32_1 = arith.constant 0 : i32
    return %c0_i32, %c0_i32_0 : i32, i32
  }
  func.func @transform_4(%arg0: i32) -> (i32, i32, i32) {
    %c0_i32 = arith.constant 0 : i32
    %c0_i32_0 = arith.constant 0 : i32
    %c0_i32_1 = arith.constant 0 : i32
    return %arg0, %c0_i32, %c0_i32_0 : i32, i32, i32
  }
}

</mosaic_0001>

<bundles_post_ra>
// kernel: tpu_custom_call.1
= control target key start
LH: loop header
LB: loop body
LE: loop exit
PB: predicated region body
PF: predicated region fallthrough
CT: control target
= control target key end

     0   :  { %s1554_s15 = smov 0   ;;  %s1957_s0 = inlined_call_operand.vmem [shape: bf16[4,64,64], index: 0, kind: input, shape index: {}]   ;;  %s1958_s1 = inlined_call_operand.vmem [shape: f32[4,64,32], index: 1, kind: input, shape index: {}]   ;;  %s1959_s2 = inlined_call_operand.vmem [shape: f32[32,16], index: 2, kind: input, shape index: {}]   ;;  %s1960_s3 = inlined_call_operand.vmem [shape: f32[1,16], index: 3, kind: input, shape index: {}]   ;;  %s1961_s4 = inlined_call_operand.vmem [shape: f32[4,64,16], index: 4, kind: output, shape index: {}]  }
   0x1 LB: > { %s1253_s16 = sadd.s32 4294967295, %s1527_s15   ;;  %p1257_p0 = scmp.ge.s32.totalorder %s1527_s15, 1  ;;  %s1527_s15 = sphi %s1554_s15, %s14_s15  }
   0x2   : > { %p176_p1 = scmp.lt.s32.totalorder %s1527_s15, 3 }
   0x4   : > { %p177_p2 = pnand %p1257_p0, %p176_p1 }
   0x5   : > { %s1258_s17 = sshll.u32 (!%p177_p2), %s1253_s16, 1 }
   0x6   : > { %180 = sbr.rel (%p177_p2) target bundleno = 1052 (0x41c), region = 36  ;;  %p211_p3 = scmp.lt.s32.totalorder (!%p177_p2), %s1258_s17, 3 }
   0xb   : > { %s1963_s17 = smov (!%p211_p3, %s1258_s17), 3  ;;  %vm277_vm0 = vcmask 523264   ;;  %vm355_vm1 = vcmask 261120   ;;  %vm704_vm2 = vcmask 130048  }
   0xc   : > { %s1335_s18 = sshll.u32 %s1963_s17, 6  ;;  %s1334_s19 = sshll.u32 %s1963_s17, 5 }
   0xd   : > { %s1571_s22 = scalar_lea.vmem %s1958_s1, %s1335_s18  ;;  %s1579_s25 = scalar_lea.vmem %s1957_s0, %s1334_s19 }
   0xe   : > { %v251_v0 = vld [vmem:[%s1571_s22 + $0x30] sm:$0xff]  ;;  %v252_v1 = vld [vmem:[%s1571_s22 + $0x38] sm:$0xff]  ;;  %v249_v2 = vld [vmem:[%s1571_s22 + $0x20] sm:$0xff]  ;;  %s1844_s12 = scalar_lea.vmem %s1961_s4, %s1335_s18 }
   0xf   : > { %v256_v3 = vpack.c.bf16 %v252_v1, %v251_v0  ;;  %v250_v4 = vld [vmem:[%s1571_s22 + $0x28] sm:$0xff]  ;;  %v247_v6 = vld [vmem:[%s1571_s22 + $0x10] sm:$0xff]  ;;  %v248_v7 = vld [vmem:[%s1571_s22 + $0x18] sm:$0xff] }
  0x10   : > { %v255_v5 = vpack.c.bf16 %v250_v4, %v249_v2  ;;  %v1505_v8 = vld [vmem:[%s1579_s25] sm:$0xff]   ;;  %v254_v9 = vpack.c.bf16 %v248_v7, %v247_v6  ;;  %v246_v11 = vld [vmem:[%s1571_s22 + $0x8] sm:$0xff]  ;;  %v1593_v14 = vld [vmem:[%s1579_s25 + $0x10] sm:$0xff]  }
  0x11   : > { %1393 = vmatprep.subr.bf16.mxu0 %v256_v3  ;;  %v245_v10 = vld [vmem:[%s1571_s22] sm:$0xff]  ;;  %1401 = vmatprep.mubr.msk.bf16.mxu0 %vm277_vm0, %v1505_v8  ;;  %v1590_v13 = vld [vmem:[%s1579_s25 + $0x8] sm:$0xff]   ;;  %v1600_v15 = vld [vmem:[%s1579_s25 + $0x18] sm:$0xff]  }
  0x12   : > { %1394 = vmatpush3.bf16.msra.mxu0 %v256_v3  ;;  %1417 = vmatprep.mubr.msk.bf16.mxu1 %vm277_vm0, %v1505_v8  ;;  %v253_v12 = vpack.c.bf16 %v246_v11, %v245_v10 }
  0x13   : > { %1395 = vmatprep.subr.bf16.mxu0 %v255_v5 }
  0x16   : > { %1396 = vmatpush3.bf16.msra.mxu0 %v255_v5 }
  0x17   : > { %1397 = vmatprep.subr.bf16.mxu0 %v254_v9 }
  0x1a   : > { %1398 = vmatpush3.bf16.msra.mxu0 %v254_v9 }
  0x1b   : > { %1399 = vmatprep.subr.bf16.mxu0 %v253_v12 }
  0x1e   : > { %1400 = vmatpush3.bf16.msra.mxu0 %v253_v12 }
  0x21   : > { %1402 = vmatmul.mubr.msk.bf16.vlgmr.msra.gmra.mxu0 %vm277_vm0, %v1590_v13 }
  0x22   : > { %1405 = vmatprep.mubr.msk.bf16.mxu0 %vm277_vm0, %v1593_v14 }
  0x29   : > { %1406 = vmatmul.mubr.msk.bf16.gmra.mxu0 %vm277_vm0, %v1600_v15 }
  0xe1   : > { %v1604_v16 = vpop.f32.mrf.mxu0 }
  0xe2   : > { %v379_v21 = vmul.f32 %v1604_v16, %v1604_v16  ;;  %v359_v27 = vsel %vm355_vm1, %v1604_v16, 0.0 }
  0xe3   : > { %v1606_v17 = vpop.f32.mrf.mxu0 }
  0xe4   : > { %v377_v19 = vmul.f32 %v1606_v17, %v1606_v17  ;;  %v356_v22 = vsel %vm355_vm1, %v1606_v17, 0.0  ;;  %v388_v34 = vsel %vm355_vm1, %v379_v21, 0.0 }
  0xe5   : > { %v1608_v18 = vpop.f32.mrf.mxu0 }
  0xe6   : > { %v385_v28 = vsel %vm355_vm1, %v377_v19, 0.0  ;;  %v380_v29 = vmul.f32 %v1608_v18, %v1608_v18  ;;  %v361_v35 = vsel %vm355_vm1, %v1608_v18, 0.0 }
  0xe7   : > { %v1612_v20 = vpop.f32.mrf.mxu0 }
  0xe8   : > { %v357_v23 = vsel %vm355_vm1, %v1612_v20, 0.0  ;;  %v378_v24 = vmul.f32 %v1612_v20, %v1612_v20  ;;  %v390_v40 = vsel %vm355_vm1, %v380_v29, 0.0 }
  0xe9   : > { %v358_v25 = vadd.f32 %v357_v23, %v356_v22  ;;  %v1407_v26 = vpop.f32.mrf.mxu0 }
  0xea   : > { %v386_v30 = vsel %vm355_vm1, %v378_v24, 0.0  ;;  %v383_v45 = vmul.f32 %v1407_v26, %v1407_v26  ;;  %v367_v51 = vsel %vm355_vm1, %v1407_v26, 0.0 }
  0xeb   : > { %v360_v31 = vadd.f32 %v359_v27, %v358_v25  ;;  %v387_v32 = vadd.f32 %v386_v30, %v385_v28  ;;  %v340_v33 = vpop.f32.mrf.mxu0 }
  0xec   : > { %v381_v36 = vmul.f32 %v340_v33, %v340_v33  ;;  %v363_v41 = vsel %vm355_vm1, %v340_v33, 0.0  ;;  %v396_v56 = vsel %vm355_vm1, %v383_v45, 0.0  ;;  %v1298_v45 = vld [vmem:[%s1571_s22 + $0x50] sm:$0xff] }
  0xed   : > { %v389_v37 = vadd.f32 %v388_v34, %v387_v32  ;;  %v362_v38 = vadd.f32 %v361_v35, %v360_v31  ;;  %v1408_v39 = vpop.f32.mrf.mxu0 }
  0xee   : > { %v392_v46 = vsel %vm355_vm1, %v381_v36, 0.0  ;;  %v384_v52 = vmul.f32 %v1408_v39, %v1408_v39  ;;  %v369_v57 = vsel %vm355_vm1, %v1408_v39, 0.0 }
  0xef   : > { %v364_v42 = vadd.f32 %v363_v41, %v362_v38  ;;  %v391_v43 = vadd.f32 %v390_v40, %v389_v37  ;;  %v343_v44 = vpop.f32.mrf.mxu0  ;;  %v1303_v41 = vld [vmem:[%s1571_s22 + $0x78] sm:$0xff] }
  0xf0   : > { %v365_v47 = vsel %vm355_vm1, %v343_v44, 0.0  ;;  %v382_v48 = vmul.f32 %v343_v44, %v343_v44  ;;  %v398_v60 = vsel %vm355_vm1, %v384_v52, 0.0  ;;  %v1674_v52 = vld [vmem:[%s1579_s25 + $0x38] sm:$0xff]  }
  0xf1   : > { %v393_v49 = vadd.f32 %v392_v46, %v391_v43  ;;  %v366_v50 = vadd.f32 %v365_v47, %v364_v42  ;;  %v1299_v46 = vld [vmem:[%s1571_s22 + $0x58] sm:$0xff] }
  0xf2   : > { %v394_v53 = vsel %vm355_vm1, %v382_v48, 0.0  ;;  %v732_v47 = vpack.c.bf16 %v1299_v46, %v1298_v45  ;;  %v1296_v48 = vld [vmem:[%s1571_s22 + $0x40] sm:$0xff] }
  0xf3   : > { %v368_v54 = vadd.f32 %v367_v51, %v366_v50  ;;  %v395_v55 = vadd.f32 %v394_v53, %v393_v49  ;;  %v1297_v49 = vld [vmem:[%s1571_s22 + $0x48] sm:$0xff]  ;;  %v1657_v50 = vld [vmem:[%s1579_s25 + $0x20] sm:$0xff]   ;;  %v234_v53 = vld [vmem:[%s1959_s2 + $0x10] sm:$0xff] }
  0xf4   : > { %v731_v51 = vpack.c.bf16 %v1297_v49, %v1296_v48 }
  0xf5   : > { %v370_v58 = vadd.f32 %v369_v57, %v368_v54  ;;  %v397_v59 = vadd.f32 %v396_v56, %v395_v55  ;;  %v233_v54 = vld [vmem:[%s1959_s2 + $0x8] sm:$0xff]  ;;  %v232_v55 = vld [vmem:[%s1959_s2] sm:$0xff] }
  0xf7   : > { %v371_v61 = vrot.slane %v370_v58, 4  ;;  %v399_v62 = vadd.f32 %v398_v60, %v397_v59 }
  0xf9   : > { %v372_v63 = vadd.f32 %v371_v61, %v370_v58  ;;  %v400_v0 = vrot.slane %v399_v62, 4 }
  0xfb   : > { %v373_v1 = vrot.slane %v372_v63, 2  ;;  %v401_v2 = vadd.f32 %v400_v0, %v399_v62 }
  0xfd   : > { %v374_v3 = vadd.f32 %v373_v1, %v372_v63  ;;  %v402_v4 = vrot.slane %v401_v2, 2 }
  0xff   : > { %v375_v5 = vrot.slane %v374_v3, 1  ;;  %v403_v6 = vadd.f32 %v402_v4, %v401_v2 }
 0x101   : > { %v376_v7 = vadd.f32 %v375_v5, %v374_v3  ;;  %v404_v8 = vrot.slane %v403_v6, 1 }
 0x103   : > { %v406_v9 = vmul.f32 0.015625, %v376_v7  ;;  %v405_v10 = vadd.f32 %v404_v8, %v403_v6 }
 0x105   : > { %v407_v11 = vmul.f32 %v406_v9, %v376_v7  ;;  %v416_v22 = vsub.f32 %v343_v44, %v406_v9  ;;  %v417_v23 = vsub.f32 %v1407_v26, %v406_v9  ;;  %v418_v24 = vsub.f32 %v1408_v39, %v406_v9  ;;  %v1300_v44 = vld [vmem:[%s1571_s22 + $0x60] sm:$0xff] }
 0x106   : > { %v415_v25 = vsub.f32 %v340_v33, %v406_v9  ;;  %v413_v34 = vsub.f32 %v1604_v16, %v406_v9  ;;  %v414_v35 = vsub.f32 %v1608_v18, %v406_v9  ;;  %v411_v26 = vsub.f32 %v1606_v17, %v406_v9  ;;  %v1302_v18 = vld [vmem:[%s1571_s22 + $0x70] sm:$0xff]  ;;  %v1301_v17 = vld [vmem:[%s1571_s22 + $0x68] sm:$0xff] }
 0x107   : > { %v408_v12 = vsub.f32 %v405_v10, %v407_v11  ;;  %v412_v33 = vsub.f32 %v1612_v20, %v406_v9  ;;  %v734_v43 = vpack.c.bf16 %v1303_v41, %v1302_v18  ;;  %v733_v20 = vpack.c.bf16 %v1301_v17, %v1300_v44 }
 0x109   : > { %v409_v19 = vmul.f32 0.015873017, %v408_v12 }
 0x10b   : > { %v410_v21 = vmax.f32 %v409_v19, 0.0 }
 0x10d   : > { %1513 = vrsqrt.f32 %v410_v21 }
 0x11a   : > { %v1514_v27 = vpop.eup %1513 }
 0x11b   : > { %v425_v28 = vmul.f32 %v1514_v27, %v416_v22  ;;  %v426_v29 = vmul.f32 %v1514_v27, %v417_v23  ;;  %v427_v30 = vmul.f32 %v1514_v27, %v418_v24  ;;  %v424_v31 = vmul.f32 %v1514_v27, %v415_v25 }
 0x11c   : > { %v422_v37 = vmul.f32 %v1514_v27, %v413_v34  ;;  %v423_v38 = vmul.f32 %v1514_v27, %v414_v35  ;;  %v420_v40 = vmul.f32 %v1514_v27, %v411_v26  ;;  %v421_v16 = vmul.f32 %v1514_v27, %v412_v33 }
 0x11d   : > { %v431_v32 = vpack.c.bf16 %v427_v30, %v426_v29  ;;  %v430_v36 = vpack.c.bf16 %v425_v28, %v424_v31 }
 0x11e   : > { %v429_v39 = vpack.c.bf16 %v423_v38, %v422_v37  ;;  %v428_v42 = vpack.c.bf16 %v421_v16, %v420_v40 }
 0x11f   : > { %1409 = vmatprep.subr.bf16.mxu1 %v431_v32 }
 0x120   : > { %1410 = vmatpush3.bf16.msra.mxu1 %v431_v32 }
 0x121   : > { %1411 = vmatprep.subr.bf16.mxu1 %v430_v36 }
 0x124   : > { %1412 = vmatpush3.bf16.msra.mxu1 %v430_v36 }
 0x125   : > { %1413 = vmatprep.subr.bf16.mxu1 %v429_v39 }
 0x128   : > { %1414 = vmatpush3.bf16.msra.mxu1 %v429_v39 }
 0x129   : > { %1415 = vmatprep.subr.bf16.mxu1 %v428_v42 }
 0x12c   : > { %1416 = vmatpush3.bf16.msra.mxu1 %v428_v42 }
 0x12d   : > { %1445 = vmatprep.subr.bf16.mxu1 %v734_v43 }
 0x12f   : > { %1418 = vmatmul.mubr.msk.bf16.vlgmr.msra.gmra.mxu1 %vm277_vm0, %v1590_v13  ;;  %v1664_v13 = vld [vmem:[%s1579_s25 + $0x28] sm:$0xff]  }
 0x130   : > { %1446 = vmatpush3.bf16.msra.mxu1 %v734_v43  ;;  %1421 = vmatprep.mubr.msk.bf16.mxu1 %vm277_vm0, %v1593_v14  ;;  %v1667_v14 = vld [vmem:[%s1579_s25 + $0x30] sm:$0xff]  }
 0x131   : > { %1447 = vmatprep.subr.bf16.mxu1 %v733_v20 }
 0x134   : > { %1448 = vmatpush3.bf16.msra.mxu1 %v733_v20 }
 0x135   : > { %1449 = vmatprep.subr.bf16.mxu1 %v732_v47 }
 0x137   : > { %1422 = vmatmul.mubr.msk.bf16.gmra.mxu1 %vm277_vm0, %v1600_v15  ;;  %v235_v15 = vld [vmem:[%s1959_s2 + $0x18] sm:$0xff] }
 0x138   : > { %1450 = vmatpush3.bf16.msra.mxu1 %v732_v47  ;;  %1453 = vmatprep.mubr.msk.bf16.mxu1 %vm277_vm0, %v1657_v50 }
 0x139   : > { %1451 = vmatprep.subr.bf16.mxu1 %v731_v51  ;;  %1425 = vmatprep.subr.mxu0 %v235_v15 }
 0x13a   : > { %1426 = vmatpush3.msra.mxu0 %v235_v15 }
 0x13b   : > { %1427 = vmatprep.subr.mxu0 %v234_v53 }
 0x13c   : > { %1452 = vmatpush3.bf16.msra.mxu1 %v731_v51  ;;  %1428 = vmatpush3.msra.mxu0 %v234_v53 }
 0x13d   : > { %1477 = vmatprep.subr.mxu1 %v235_v15  ;;  %1429 = vmatprep.subr.mxu0 %v233_v54 }
 0x13e   : > { %1430 = vmatpush3.msra.mxu0 %v233_v54 }
 0x13f   : > { %1454 = vmatmul.mubr.msk.bf16.vlgmr.msra.gmra.mxu1 %vm277_vm0, %v1664_v13  ;;  %1431 = vmatprep.subr.mxu0 %v232_v55 }
 0x140   : > { %1457 = vmatprep.mubr.msk.bf16.mxu1 %vm277_vm0, %v1667_v14  ;;  %1478 = vmatpush3.msra.mxu1 %v235_v15 }
 0x141   : > { %1479 = vmatprep.subr.mxu1 %v234_v53  ;;  %1432 = vmatpush3.msra.mxu0 %v232_v55 }
 0x142   : > { %1480 = vmatpush3.msra.mxu1 %v234_v53 }
 0x143   : > { %1481 = vmatprep.subr.mxu1 %v233_v54 }
 0x144   : > { %1482 = vmatpush3.msra.mxu1 %v233_v54 }
 0x145   : > { %1483 = vmatprep.subr.mxu1 %v232_v55 }
 0x146   : > { %1484 = vmatpush3.msra.mxu1 %v232_v55 }
 0x147   : > { %1458 = vmatmul.mubr.msk.bf16.gmra.mxu1 %vm277_vm0, %v1674_v52 }
 0x1ef   : > { %v1690_v56 = vpop.f32.mrf.mxu1 }
 0x1f0   : > { %v520_v61 = vmul.f32 %v1690_v56, %v1690_v56  ;;  %v500_v3 = vsel %vm355_vm1, %v1690_v56, 0.0 }
 0x1f1   : > { %v1692_v57 = vpop.f32.mrf.mxu1 }
 0x1f2   : > { %v518_v59 = vmul.f32 %v1692_v57, %v1692_v57  ;;  %v497_v62 = vsel %vm355_vm1, %v1692_v57, 0.0  ;;  %v529_v10 = vsel %vm355_vm1, %v520_v61, 0.0 }
 0x1f3   : > { %v1694_v58 = vpop.f32.mrf.mxu1 }
 0x1f4   : > { %v526_v4 = vsel %vm355_vm1, %v518_v59, 0.0  ;;  %v521_v5 = vmul.f32 %v1694_v58, %v1694_v58  ;;  %v502_v11 = vsel %vm355_vm1, %v1694_v58, 0.0 }
 0x1f5   : > { %v1698_v60 = vpop.f32.mrf.mxu1 }
 0x1f6   : > { %v498_v63 = vsel %vm355_vm1, %v1698_v60, 0.0  ;;  %v519_v0 = vmul.f32 %v1698_v60, %v1698_v60  ;;  %v531_v23 = vsel %vm355_vm1, %v521_v5, 0.0 }
 0x1f7   : > { %v499_v1 = vadd.f32 %v498_v63, %v497_v62  ;;  %v1708_v2 = vpop.f32.mrf.mxu1 }
 0x1f8   : > { %v527_v6 = vsel %vm355_vm1, %v519_v0, 0.0  ;;  %v524_v29 = vmul.f32 %v1708_v2, %v1708_v2  ;;  %v508_v37 = vsel %vm355_vm1, %v1708_v2, 0.0 }
 0x1f9   : > { %v501_v7 = vadd.f32 %v500_v3, %v499_v1  ;;  %v528_v8 = vadd.f32 %v527_v6, %v526_v4  ;;  %v1716_v9 = vpop.f32.mrf.mxu1 }
 0x1fa   : > { %v522_v12 = vmul.f32 %v1716_v9, %v1716_v9  ;;  %v504_v24 = vsel %vm355_vm1, %v1716_v9, 0.0  ;;  %v537_v16 = vsel %vm355_vm1, %v524_v29, 0.0 }
 0x1fb   : > { %v530_v19 = vadd.f32 %v529_v10, %v528_v8  ;;  %v503_v21 = vadd.f32 %v502_v11, %v501_v7  ;;  %v1723_v22 = vpop.f32.mrf.mxu1 }
 0x1fc   : > { %v533_v30 = vsel %vm355_vm1, %v522_v12, 0.0  ;;  %v525_v38 = vmul.f32 %v1723_v22, %v1723_v22  ;;  %v510_v18 = vsel %vm355_vm1, %v1723_v22, 0.0 }
 0x1fd   : > { %v505_v25 = vadd.f32 %v504_v24, %v503_v21  ;;  %v532_v27 = vadd.f32 %v531_v23, %v530_v19  ;;  %v1728_v28 = vpop.f32.mrf.mxu1 }
 0x1fe   : > { %v506_v31 = vsel %vm355_vm1, %v1728_v28, 0.0  ;;  %v523_v32 = vmul.f32 %v1728_v28, %v1728_v28  ;;  %v539_v44 = vsel %vm355_vm1, %v525_v38, 0.0 }
 0x1ff   : > { %v534_v34 = vadd.f32 %v533_v30, %v532_v27  ;;  %v507_v35 = vadd.f32 %v506_v31, %v505_v25  ;;  %v1737_v36 = vpop.f32.mrf.mxu1 }
 0x200   : > { %v535_v26 = vsel %vm355_vm1, %v523_v32, 0.0  ;;  %v855_v47 = vmul.f32 %v1737_v36, %v1737_v36  ;;  %v835_v59 = vsel %vm355_vm1, %v1737_v36, 0.0 }
 0x201   : > { %v509_v33 = vadd.f32 %v508_v37, %v507_v35  ;;  %v536_v39 = vadd.f32 %v535_v26, %v534_v34  ;;  %v1744_v40 = vpop.f32.mrf.mxu1 }
 0x202   : > { %v853_v17 = vmul.f32 %v1744_v40, %v1744_v40  ;;  %v832_v48 = vsel %vm355_vm1, %v1744_v40, 0.0  ;;  %v864_v6 = vsel %vm355_vm1, %v855_v47, 0.0 }
 0x203   : > { %v511_v41 = vadd.f32 %v510_v18, %v509_v33  ;;  %v538_v42 = vadd.f32 %v537_v16, %v536_v39  ;;  %v1749_v43 = vpop.f32.mrf.mxu1 }
 0x204   : > { %v861_v61 = vsel %vm355_vm1, %v853_v17, 0.0  ;;  %v856_v62 = vmul.f32 %v1749_v43, %v1749_v43  ;;  %v837_v7 = vsel %vm355_vm1, %v1749_v43, 0.0 }
 0x205   : > { %v512_v20 = vrot.slane %v511_v41, 4  ;;  %v540_v45 = vadd.f32 %v539_v44, %v538_v42  ;;  %v1754_v46 = vpop.f32.mrf.mxu1 }
 0x206   : > { %v833_v49 = vsel %vm355_vm1, %v1754_v46, 0.0  ;;  %v854_v51 = vmul.f32 %v1754_v46, %v1754_v46  ;;  %v866_v23 = vsel %vm355_vm1, %v856_v62, 0.0 }
 0x207   : > { %v513_v15 = vadd.f32 %v512_v20, %v511_v41  ;;  %v541_v53 = vrot.slane %v540_v45, 4  ;;  %v834_v54 = vadd.f32 %v833_v49, %v832_v48  ;;  %v1764_v55 = vpop.f32.mrf.mxu1 }
 0x208   : > { %v862_v63 = vsel %vm355_vm1, %v854_v51, 0.0  ;;  %v859_v32 = vmul.f32 %v1764_v55, %v1764_v55  ;;  %v843_v16 = vsel %vm355_vm1, %v1764_v55, 0.0 }
 0x209   : > { %v514_v0 = vrot.slane %v513_v15, 2  ;;  %v542_v1 = vadd.f32 %v541_v53, %v540_v45  ;;  %v836_v3 = vadd.f32 %v835_v59, %v834_v54  ;;  %v863_v4 = vadd.f32 %v862_v63, %v861_v61  ;;  %v1772_v5 = vpop.f32.mrf.mxu1 }
 0x20a   : > { %v857_v8 = vmul.f32 %v1772_v5, %v1772_v5  ;;  %v839_v24 = vsel %vm355_vm1, %v1772_v5, 0.0  ;;  %v872_v20 = vsel %vm355_vm1, %v859_v32, 0.0 }
 0x20b   : > { %v515_v10 = vadd.f32 %v514_v0, %v513_v15  ;;  %v543_v11 = vrot.slane %v542_v1, 2  ;;  %v865_v12 = vadd.f32 %v864_v6, %v863_v4  ;;  %v838_v19 = vadd.f32 %v837_v7, %v836_v3  ;;  %v1779_v21 = vpop.f32.mrf.mxu1 }
 0x20c   : > { %v868_v34 = vsel %vm355_vm1, %v857_v8, 0.0  ;;  %v860_v18 = vmul.f32 %v1779_v21, %v1779_v21  ;;  %v845_v45 = vsel %vm355_vm1, %v1779_v21, 0.0 }
 0x20d   : > { %v516_v25 = vrot.slane %v515_v10, 1  ;;  %v544_v27 = vadd.f32 %v543_v11, %v542_v1  ;;  %v840_v29 = vadd.f32 %v839_v24, %v838_v19  ;;  %v867_v30 = vadd.f32 %v866_v23, %v865_v12  ;;  %v1784_v31 = vpop.f32.mrf.mxu1 }
 0x20e   : > { %v841_v35 = vsel %vm355_vm1, %v1784_v31, 0.0  ;;  %v858_v37 = vmul.f32 %v1784_v31, %v1784_v31  ;;  %v874_v15 = vsel %vm355_vm1, %v860_v18, 0.0 }
 0x20f   : > { %v517_v38 = vadd.f32 %v516_v25, %v515_v10  ;;  %v545_v26 = vrot.slane %v544_v27, 1  ;;  %v869_v33 = vadd.f32 %v868_v34, %v867_v30  ;;  %v842_v39 = vadd.f32 %v841_v35, %v840_v29 }
 0x210   : > { %v870_v41 = vsel %vm355_vm1, %v858_v37, 0.0 }
 0x211   : > { %v547_v42 = vmul.f32 0.015625, %v517_v38  ;;  %v844_v44 = vadd.f32 %v843_v16, %v842_v39  ;;  %v871_v17 = vadd.f32 %v870_v41, %v869_v33  ;;  %v546_v47 = vadd.f32 %v545_v26, %v544_v27 }
 0x213   : > { %v548_v48 = vmul.f32 %v547_v42, %v517_v38  ;;  %v846_v49 = vadd.f32 %v845_v45, %v844_v44  ;;  %v873_v51 = vadd.f32 %v872_v20, %v871_v17  ;;  %v552_v27 = vsub.f32 %v1692_v57, %v547_v42 }
 0x214   : > { %v553_v29 = vsub.f32 %v1698_v60, %v547_v42  ;;  %v554_v37 = vsub.f32 %v1690_v56, %v547_v42  ;;  %v555_v26 = vsub.f32 %v1694_v58, %v547_v42  ;;  %v556_v57 = vsub.f32 %v1716_v9, %v547_v42 }
 0x215   : > { %v549_v53 = vsub.f32 %v546_v47, %v548_v48  ;;  %v847_v54 = vrot.slane %v846_v49, 4  ;;  %v875_v59 = vadd.f32 %v874_v15, %v873_v51  ;;  %v557_v39 = vsub.f32 %v1728_v28, %v547_v42 }
 0x216   : > { %v558_v56 = vsub.f32 %v1708_v2, %v547_v42  ;;  %v559_v58 = vsub.f32 %v1723_v22, %v547_v42 }
 0x217   : > { %v550_v61 = vmul.f32 0.015873017, %v549_v53  ;;  %v848_v62 = vadd.f32 %v847_v54, %v846_v49  ;;  %v876_v63 = vrot.slane %v875_v59, 4 }
 0x219   : > { %v551_v0 = vmax.f32 %v550_v61, 0.0  ;;  %v849_v1 = vrot.slane %v848_v62, 2  ;;  %v877_v3 = vadd.f32 %v876_v63, %v875_v59 }
 0x21b   : > { %1515 = vrsqrt.f32 %v551_v0  ;;  %v850_v4 = vadd.f32 %v849_v1, %v848_v62  ;;  %v878_v6 = vrot.slane %v877_v3, 2 }
 0x21d   : > { %v851_v7 = vrot.slane %v850_v4, 1  ;;  %v879_v8 = vadd.f32 %v878_v6, %v877_v3 }
 0x21f   : > { %v852_v10 = vadd.f32 %v851_v7, %v850_v4  ;;  %v880_v11 = vrot.slane %v879_v8, 1 }
 0x221   : > { %v882_v12 = vmul.f32 0.015625, %v852_v10  ;;  %v881_v19 = vadd.f32 %v880_v11, %v879_v8 }
 0x223   : > { %v883_v23 = vmul.f32 %v882_v12, %v852_v10  ;;  %v892_v9 = vsub.f32 %v1784_v31, %v882_v12  ;;  %v893_v44 = vsub.f32 %v1764_v55, %v882_v12  ;;  %v894_v28 = vsub.f32 %v1779_v21, %v882_v12 }
 0x224   : > { %v891_v17 = vsub.f32 %v1772_v5, %v882_v12  ;;  %v889_v42 = vsub.f32 %v1737_v36, %v882_v12  ;;  %v890_v31 = vsub.f32 %v1749_v43, %v882_v12  ;;  %v887_v5 = vsub.f32 %v1744_v40, %v882_v12  ;;  %v1837_v36 = vld [vmem:[%s1960_s3] ss:$0 sm:$0xff] }
 0x225   : > { %v884_v24 = vsub.f32 %v881_v19, %v883_v23  ;;  %v888_v51 = vsub.f32 %v1754_v46, %v882_v12 }
 0x227   : > { %v885_v25 = vmul.f32 0.015873017, %v884_v24 }
 0x228   : > { %v1516_v30 = vpop.eup %1515 }
 0x229   : > { %v886_v32 = vmax.f32 %v885_v25, 0.0  ;;  %v561_v34 = vmul.f32 %v1516_v30, %v552_v27  ;;  %v562_v35 = vmul.f32 %v1516_v30, %v553_v29  ;;  %v563_v38 = vmul.f32 %v1516_v30, %v554_v37 }
 0x22a   : > { %v564_v33 = vmul.f32 %v1516_v30, %v555_v26  ;;  %v565_v60 = vmul.f32 %v1516_v30, %v556_v57  ;;  %v566_v16 = vmul.f32 %v1516_v30, %v557_v39  ;;  %v567_v18 = vmul.f32 %v1516_v30, %v558_v56 }
 0x22b   : > { %1517 = vrsqrt.f32 %v886_v32  ;;  %1433 = vmatprep.mubr.msk.f32.mxu0 %vm355_vm1, %v561_v34  ;;  %v568_v41 = vmul.f32 %v1516_v30, %v559_v58 }
 0x22c   : > { %1434 = vmatmul.mubr.msk.f32.vlgmr.msra.gmra.mxu0 %vm355_vm1, %v562_v35 }
 0x22d   : > { %1436 = vmatprep.mubr.msk.f32.mxu0 %vm355_vm1, %v563_v38 }
 0x230   : > { %1437 = vmatmul.mubr.msk.f32.gmra.mxu0 %vm355_vm1, %v564_v33 }
 0x231   : > { %1439 = vmatprep.mubr.msk.f32.mxu0 %vm355_vm1, %v565_v60 }
 0x234   : > { %1440 = vmatmul.mubr.msk.f32.gmra.mxu0 %vm355_vm1, %v566_v16 }
 0x235   : > { %1442 = vmatprep.mubr.msk.f32.mxu0 %vm355_vm1, %v567_v18 }
 0x238   : > { %v1518_v20 = vpop.eup %1517  ;;  %1443 = vmatmul.mubr.msk.f32.gmra.mxu0 %vm355_vm1, %v568_v41 }
 0x239   : > { %v901_v2 = vmul.f32 %v1518_v20, %v892_v9  ;;  %v902_v45 = vmul.f32 %v1518_v20, %v893_v44  ;;  %v903_v47 = vmul.f32 %v1518_v20, %v894_v28  ;;  %v900_v48 = vmul.f32 %v1518_v20, %v891_v17  ;;  %1469 = vmatprep.mubr.msk.bf16.mxu0 %vm277_vm0, %v1657_v50 }
 0x23a   : > { %v898_v21 = vmul.f32 %v1518_v20, %v889_v42  ;;  %v899_v49 = vmul.f32 %v1518_v20, %v890_v31  ;;  %v896_v53 = vmul.f32 %v1518_v20, %v887_v5  ;;  %v897_v54 = vmul.f32 %v1518_v20, %v888_v51 }
 0x23b   : > { %v907_v22 = vpack.c.bf16 %v903_v47, %v902_v45  ;;  %v906_v55 = vpack.c.bf16 %v901_v2, %v900_v48 }
 0x23c   : > { %v905_v15 = vpack.c.bf16 %v899_v49, %v898_v21  ;;  %v904_v50 = vpack.c.bf16 %v897_v54, %v896_v53 }
 0x23d   : > { %1461 = vmatprep.subr.bf16.mxu0 %v907_v22 }
 0x23e   : > { %1462 = vmatpush3.bf16.msra.mxu0 %v907_v22 }
 0x23f   : > { %1463 = vmatprep.subr.bf16.mxu0 %v906_v55 }
 0x242   : > { %1464 = vmatpush3.bf16.msra.mxu0 %v906_v55 }
 0x243   : > { %1465 = vmatprep.subr.bf16.mxu0 %v905_v15 }
 0x246   : > { %1466 = vmatpush3.bf16.msra.mxu0 %v905_v15 }
 0x247   : > { %1467 = vmatprep.subr.bf16.mxu0 %v904_v50 }
 0x24a   : > { %1468 = vmatpush3.bf16.msra.mxu0 %v904_v50 }
 0x24d   : > { %1470 = vmatmul.mubr.msk.bf16.vlgmr.msra.gmra.mxu0 %vm277_vm0, %v1664_v13 }
 0x24e   : > { %1473 = vmatprep.mubr.msk.bf16.mxu0 %vm277_vm0, %v1667_v14 }
 0x255   : > { %1474 = vmatmul.mubr.msk.bf16.gmra.mxu0 %vm277_vm0, %v1674_v52 }
 0x2ec   : > { %v1435_v13 = vpop.f32.mrf.mxu0 }
 0x2ed   : > { %v671_v14 = vadd.f32 %v1435_v13, %v1837_v36 }
 0x2ee   : > { %v665_v52 = vpop.f32.mrf.mxu0 }
 0x2ef   : > { %706 = vst.msk [vmem:[%s1844_s12 + $0x8] sm:$0xff] %vm704_vm2, %v671_v14  ;;  %v666_v40 = vadd.f32 %v1837_v36, %v665_v52 }
 0x2f0   : > { %v1438_v43 = vpop.f32.mrf.mxu0 }
 0x2f1   : > { %705 = vst.msk [vmem:[%s1844_s12] sm:$0xff] %vm704_vm2, %v666_v40  ;;  %v681_v46 = vadd.f32 %v1438_v43, %v1837_v36 }
 0x2f2   : > { %v675_v59 = vpop.f32.mrf.mxu0 }
 0x2f3   : > { %708 = vst.msk [vmem:[%s1844_s12 + $0x18] sm:$0xff] %vm704_vm2, %v681_v46  ;;  %v676_v61 = vadd.f32 %v1837_v36, %v675_v59 }
 0x2f4   : > { %v1441_v62 = vpop.f32.mrf.mxu0 }
 0x2f5   : > { %707 = vst.msk [vmem:[%s1844_s12 + $0x10] sm:$0xff] %vm704_vm2, %v676_v61  ;;  %v691_v63 = vadd.f32 %v1441_v62, %v1837_v36 }
 0x2f6   : > { %v685_v0 = vpop.f32.mrf.mxu0 }
 0x2f7   : > { %710 = vst.msk [vmem:[%s1844_s12 + $0x28] sm:$0xff] %vm704_vm2, %v691_v63  ;;  %v686_v1 = vadd.f32 %v1837_v36, %v685_v0 }
 0x2f8   : > { %v1444_v3 = vpop.f32.mrf.mxu0 }
 0x2f9   : > { %709 = vst.msk [vmem:[%s1844_s12 + $0x20] sm:$0xff] %vm704_vm2, %v686_v1  ;;  %v701_v4 = vadd.f32 %v1444_v3, %v1837_v36 }
 0x2fa   : > { %v695_v6 = vpop.f32.mrf.mxu0 }
 0x2fb   : > { %712 = vst.msk [vmem:[%s1844_s12 + $0x38] sm:$0xff] %vm704_vm2, %v701_v4  ;;  %v696_v7 = vadd.f32 %v1837_v36, %v695_v6 }
 0x2fd   : > { %711 = vst.msk [vmem:[%s1844_s12 + $0x30] sm:$0xff] %vm704_vm2, %v696_v7 }
 0x30d   : > { %v1870_v8 = vpop.f32.mrf.mxu0 }
 0x30e   : > { %v996_v23 = vmul.f32 %v1870_v8, %v1870_v8  ;;  %v976_v32 = vsel %vm355_vm1, %v1870_v8, 0.0 }
 0x30f   : > { %v1872_v10 = vpop.f32.mrf.mxu0 }
 0x310   : > { %v994_v12 = vmul.f32 %v1872_v10, %v1872_v10  ;;  %v973_v24 = vsel %vm355_vm1, %v1872_v10, 0.0  ;;  %v1005_v33 = vsel %vm355_vm1, %v996_v23, 0.0 }
 0x311   : > { %v1874_v11 = vpop.f32.mrf.mxu0 }
 0x312   : > { %v1002_v34 = vsel %vm355_vm1, %v994_v12, 0.0  ;;  %v997_v35 = vmul.f32 %v1874_v11, %v1874_v11  ;;  %v978_v60 = vsel %vm355_vm1, %v1874_v11, 0.0 }
 0x313   : > { %v1878_v19 = vpop.f32.mrf.mxu0 }
 0x314   : > { %v974_v25 = vsel %vm355_vm1, %v1878_v19, 0.0  ;;  %v995_v27 = vmul.f32 %v1878_v19, %v1878_v19  ;;  %v1007_v58 = vsel %vm355_vm1, %v997_v35, 0.0 }
 0x315   : > { %v975_v29 = vadd.f32 %v974_v25, %v973_v24  ;;  %v1888_v30 = vpop.f32.mrf.mxu0 }
 0x316   : > { %v1003_v37 = vsel %vm355_vm1, %v995_v27, 0.0  ;;  %v1000_v17 = vmul.f32 %v1888_v30, %v1888_v30  ;;  %v984_v22 = vsel %vm355_vm1, %v1888_v30, 0.0 }
 0x317   : > { %v977_v38 = vadd.f32 %v976_v32, %v975_v29  ;;  %v1004_v26 = vadd.f32 %v1003_v37, %v1002_v34  ;;  %v958_v57 = vpop.f32.mrf.mxu0 }
 0x318   : > { %v998_v39 = vmul.f32 %v958_v57, %v958_v57  ;;  %v980_v41 = vsel %vm355_vm1, %v958_v57, 0.0  ;;  %v1013_v49 = vsel %vm355_vm1, %v1000_v17, 0.0 }
 0x319   : > { %v1006_v56 = vadd.f32 %v1005_v33, %v1004_v26  ;;  %v979_v16 = vadd.f32 %v978_v60, %v977_v38  ;;  %v1899_v18 = vpop.f32.mrf.mxu0 }
 0x31a   : > { %v1009_v20 = vsel %vm355_vm1, %v998_v39, 0.0  ;;  %v1001_v42 = vmul.f32 %v1899_v18, %v1899_v18  ;;  %v986_v5 = vsel %vm355_vm1, %v1899_v18, 0.0 }
 0x31b   : > { %v981_v9 = vadd.f32 %v980_v41, %v979_v16  ;;  %v1008_v44 = vadd.f32 %v1007_v58, %v1006_v56  ;;  %v961_v28 = vpop.f32.mrf.mxu0 }
 0x31c   : > { %v982_v2 = vsel %vm355_vm1, %v961_v28, 0.0  ;;  %v999_v45 = vmul.f32 %v961_v28, %v961_v28  ;;  %v1015_v53 = vsel %vm355_vm1, %v1001_v42, 0.0 }
 0x31d   : > { %v1010_v47 = vadd.f32 %v1009_v20, %v1008_v44  ;;  %v983_v48 = vadd.f32 %v982_v2, %v981_v9 }
 0x31e   : > { %v1011_v31 = vsel %vm355_vm1, %v999_v45, 0.0 }
 0x31f   : > { %v985_v55 = vadd.f32 %v984_v22, %v983_v48  ;;  %v1012_v21 = vadd.f32 %v1011_v31, %v1010_v47 }
 0x321   : > { %v987_v51 = vadd.f32 %v986_v5, %v985_v55  ;;  %v1014_v15 = vadd.f32 %v1013_v49, %v1012_v21 }
 0x323   : > { %v988_v54 = vrot.slane %v987_v51, 4  ;;  %v1016_v50 = vadd.f32 %v1015_v53, %v1014_v15 }
 0x325   : > { %v989_v13 = vadd.f32 %v988_v54, %v987_v51  ;;  %v1017_v14 = vrot.slane %v1016_v50, 4 }
 0x327   : > { %v990_v52 = vrot.slane %v989_v13, 2  ;;  %v1018_v40 = vadd.f32 %v1017_v14, %v1016_v50 }
 0x329   : > { %v991_v43 = vadd.f32 %v990_v52, %v989_v13  ;;  %v1019_v46 = vrot.slane %v1018_v40, 2 }
 0x32b   : > { %v992_v59 = vrot.slane %v991_v43, 1  ;;  %v1020_v61 = vadd.f32 %v1019_v46, %v1018_v40 }
 0x32d   : > { %v993_v62 = vadd.f32 %v992_v59, %v991_v43  ;;  %v1021_v63 = vrot.slane %v1020_v61, 1 }
 0x32f   : > { %v1023_v0 = vmul.f32 0.015625, %v993_v62  ;;  %v1022_v1 = vadd.f32 %v1021_v63, %v1020_v61 }
 0x331   : > { %v1024_v3 = vmul.f32 %v1023_v0, %v993_v62  ;;  %v1028_v12 = vsub.f32 %v1872_v10, %v1023_v0  ;;  %v1029_v23 = vsub.f32 %v1878_v19, %v1023_v0  ;;  %v1030_v29 = vsub.f32 %v1870_v8, %v1023_v0 }
 0x332   : > { %v1031_v34 = vsub.f32 %v1874_v11, %v1023_v0  ;;  %v1032_v35 = vsub.f32 %v958_v57, %v1023_v0  ;;  %v1033_v38 = vsub.f32 %v961_v28, %v1023_v0  ;;  %v1034_v8 = vsub.f32 %v1888_v30, %v1023_v0 }
 0x333   : > { %v1025_v4 = vsub.f32 %v1022_v1, %v1024_v3  ;;  %v1035_v11 = vsub.f32 %v1899_v18, %v1023_v0 }
 0x335   : > { %v1026_v6 = vmul.f32 0.015873017, %v1025_v4 }
 0x337   : > { %v1027_v7 = vmax.f32 %v1026_v6, 0.0 }
 0x339   : > { %1519 = vrsqrt.f32 %v1027_v7 }
 0x346   : > { %v1520_v24 = vpop.eup %1519 }
 0x347   : > { %v1037_v25 = vmul.f32 %v1520_v24, %v1028_v12  ;;  %v1038_v27 = vmul.f32 %v1520_v24, %v1029_v23  ;;  %v1039_v32 = vmul.f32 %v1520_v24, %v1030_v29  ;;  %v1040_v37 = vmul.f32 %v1520_v24, %v1031_v34 }
 0x348   : > { %v1041_v10 = vmul.f32 %v1520_v24, %v1032_v35  ;;  %v1042_v19 = vmul.f32 %v1520_v24, %v1033_v38  ;;  %v1043_v26 = vmul.f32 %v1520_v24, %v1034_v8  ;;  %v1044_v57 = vmul.f32 %v1520_v24, %v1035_v11 }
 0x349   : > { %1485 = vmatprep.mubr.msk.f32.mxu1 %vm355_vm1, %v1037_v25 }
 0x34a   : > { %1486 = vmatmul.mubr.msk.f32.vlgmr.msra.gmra.mxu1 %vm355_vm1, %v1038_v27 }
 0x34b   : > { %1488 = vmatprep.mubr.msk.f32.mxu1 %vm355_vm1, %v1039_v32 }
 0x34e   : > { %1489 = vmatmul.mubr.msk.f32.gmra.mxu1 %vm355_vm1, %v1040_v37 }
 0x34f   : > { %1491 = vmatprep.mubr.msk.f32.mxu1 %vm355_vm1, %v1041_v10 }
 0x352   : > { %1492 = vmatmul.mubr.msk.f32.gmra.mxu1 %vm355_vm1, %v1042_v19 }
 0x353   : > { %1494 = vmatprep.mubr.msk.f32.mxu1 %vm355_vm1, %v1043_v26 }
 0x356   : > { %1495 = vmatmul.mubr.msk.f32.gmra.mxu1 %vm355_vm1, %v1044_v57 }
 0x40a   : > { %v1487_v33 = vpop.f32.mrf.mxu1 }
 0x40b   : > { %v1141_v60 = vadd.f32 %v1487_v33, %v1837_v36 }
 0x40c   : > { %v1135_v39 = vpop.f32.mrf.mxu1 }
 0x40d   : > { %1325 = vst.msk [vmem:[%s1844_s12 + $0x48] sm:$0xff] %vm704_vm2, %v1141_v60  ;;  %v1136_v30 = vadd.f32 %v1837_v36, %v1135_v39 }
 0x40e   : > { %v1490_v56 = vpop.f32.mrf.mxu1 }
 0x40f   : > { %1324 = vst.msk [vmem:[%s1844_s12 + $0x40] sm:$0xff] %vm704_vm2, %v1136_v30  ;;  %v1151_v16 = vadd.f32 %v1490_v56, %v1837_v36 }
 0x410   : > { %v1145_v18 = vpop.f32.mrf.mxu1 }
 0x411   : > { %1327 = vst.msk [vmem:[%s1844_s12 + $0x58] sm:$0xff] %vm704_vm2, %v1151_v16  ;;  %v1146_v58 = vadd.f32 %v1837_v36, %v1145_v18 }
 0x412   : > { %v1493_v41 = vpop.f32.mrf.mxu1 }
 0x413   : > { %1326 = vst.msk [vmem:[%s1844_s12 + $0x50] sm:$0xff] %vm704_vm2, %v1146_v58  ;;  %v1161_v9 = vadd.f32 %v1493_v41, %v1837_v36 }
 0x414   : > { %v1155_v44 = vpop.f32.mrf.mxu1 }
 0x415   : > { %1329 = vst.msk [vmem:[%s1844_s12 + $0x68] sm:$0xff] %vm704_vm2, %v1161_v9  ;;  %v1156_v28 = vadd.f32 %v1837_v36, %v1155_v44 }
 0x416   : > { %v1496_v17 = vpop.f32.mrf.mxu1 }
 0x417   : > { %1328 = vst.msk [vmem:[%s1844_s12 + $0x60] sm:$0xff] %vm704_vm2, %v1156_v28  ;;  %v1171_v20 = vadd.f32 %v1496_v17, %v1837_v36 }
 0x418   : > { %v1165_v2 = vpop.f32.mrf.mxu1 }
 0x419   : > { %1331 = vst.msk [vmem:[%s1844_s12 + $0x78] sm:$0xff] %vm704_vm2, %v1171_v20  ;;  %v1166_v45 = vadd.f32 %v1837_v36, %v1165_v2 }
 0x41b   : > { %1330 = vst.msk [vmem:[%s1844_s12 + $0x70] sm:$0xff] %vm704_vm2, %v1166_v45 }
 0x41c PF: > { %s14_s15 = sadd.s32 1, %s1527_s15  }
 0x41d   : > { %p11_p4 = scmp.ge.s32.totalorder %s14_s15, 4  }
 0x41f   :  { %13 = sbr.rel (!%p11_p4) target bundleno = 1 (0x1), region = 72 }

</bundles_post_ra>
